<compile_context>
chip_gen: v6e
topology: v6e:2x2x1
jax: 0.10.0
libtpu: 0.0.40
codegen_flags: <defaults>
</compile_context>

<pallas_src>
import jax
import jax.numpy as jnp
from jax.experimental import pallas as pl
from jax.experimental.pallas import tpu as pltpu

BN_EPS = 1e-5


def mike_net_kernel(x1_ref, x2_ref, w1_ref, p_ref, out_ref):
    E = x1_ref.shape[1]
    wdt = w1_ref.dtype

    # Packed per-feature params: static row slices of the single [5, E] tile.
    b1 = p_ref[0:1, :]         # folded bias b1a + b1b            [1, E]
    gamma = p_ref[1:2, :]      # BN weight                        [1, E]
    beta = p_ref[2:3, :]       # BN bias                          [1, E]
    w4 = p_ref[3:4, :]         # final projection as a row vector [1, E]
    b4 = p_ref[4:5, 0:1]       # final bias (scalar)              [1, 1]

    # First layer: two MXU matmuls against static halves of the stacked
    # [2E, E] weight, accumulated in f32. (No wrapper-side concat needed.)
    h = (jnp.dot(x1_ref[...].astype(wdt), w1_ref[:E, :],
                 preferred_element_type=jnp.float32)
         + jnp.dot(x2_ref[...].astype(wdt), w1_ref[E:, :],
                   preferred_element_type=jnp.float32)
         + b1)

    # BatchNorm1d (training-mode batch stats), one-pass moments: both
    # cross-sublane reductions issue back-to-back on the XLU.
    inv_b = 1.0 / h.shape[0]
    s1 = jnp.sum(h, axis=0, keepdims=True)            # [1, E]
    s2 = jnp.sum(h * h, axis=0, keepdims=True)        # [1, E]
    mean = s1 * inv_b
    # Clamp: E[x^2]-E[x]^2 can cancel slightly negative in f32 -> NaN in rsqrt.
    var = jnp.maximum(s2 * inv_b - mean * mean, 0.0)
    inv_std = jax.lax.rsqrt(var + BN_EPS)

    # Fold BN affine into one per-feature scale/shift ([1,E] ops), then a
    # single fused multiply-add + ReLU on the [B,E] tile.
    scale = inv_std * gamma
    shift = beta - mean * scale
    r = jnp.maximum(h * scale + shift, 0.0)

    # Final E -> 1 projection: VPU multiply + XLU lane reduce (an N=1 MXU
    # matmul would waste a full push/pop for <1% utilization).
    logits = jnp.sum(r * w4, axis=-1, keepdims=True) + b4
    out_ref[...] = jax.nn.sigmoid(logits).astype(out_ref.dtype)


def mike_net_linear_fc(x1, x2, params):
    """Forward pass. params: dict from init_params (pre-fused/packed weights)."""
    B, _E = x1.shape
    vmem = pl.BlockSpec(memory_space=pltpu.MemorySpace.VMEM)
    # Output is [B,1] (lane width 1 -> masked stores), but output bytes are
    # ~1/64 of input bytes here; not worth a lane-dense slab + reshape.
    return pl.pallas_call(
        mike_net_kernel,
        out_shape=jax.ShapeDtypeStruct((B, 1), jnp.float32),
        in_specs=[vmem, vmem, vmem, vmem],
        out_specs=vmem,
    )(x1, x2, params["w1"], params["p"])


def init_params(key, embedding_dim, matmul_dtype=jnp.bfloat16):
    """PyTorch-style uniform fan-in init, pre-fused/packed for the kernel.

    matmul_dtype: storage dtype of the stacked first-layer weight. bf16
    (default) is MXU-native on v5e/v6e/v7x and halves weight DMA bytes;
    pass jnp.float32 for exact parity with the PyTorch module.
    """
    E = embedding_dim
    ks = jax.random.split(key, 6)
    bound = 1.0 / (E ** 0.5)
    w1a = jax.random.uniform(ks[0], (E, E), jnp.float32, -bound, bound)
    b1a = jax.random.uniform(ks[1], (E,), jnp.float32, -bound, bound)
    w1b = jax.random.uniform(ks[2], (E, E), jnp.float32, -bound, bound)
    b1b = jax.random.uniform(ks[3], (E,), jnp.float32, -bound, bound)
    w4 = jax.random.uniform(ks[4], (E,), jnp.float32, -bound, bound)
    b4 = jax.random.uniform(ks[5], (), jnp.float32, -bound, bound)

    # Single packed [5, E] f32 array: b1 / gamma / beta / w4-row / b4-scalar.
    packed = jnp.stack([
        b1a + b1b,                                   # row 0: folded bias
        jnp.ones((E,), jnp.float32),                 # row 1: BN gamma
        jnp.zeros((E,), jnp.float32),                # row 2: BN beta
        w4,                                          # row 3: projection row
        jnp.zeros((E,), jnp.float32).at[0].set(b4),  # row 4: b4 at lane 0
    ], axis=0)

    return dict(
        # Stacked [2E, E] weight, already [in, out] for x @ W.
        w1=jnp.concatenate([w1a, w1b], axis=0).astype(matmul_dtype),
        p=packed,
    )


def reference(x1, x2, p):
    """Pure-JAX reference with the original (unfused, two-pass BN) math."""
    E = x1.shape[1]
    w1 = p["w1"].astype(jnp.float32)
    b1, gamma, beta, w4 = (p["p"][i] for i in range(4))
    b4 = p["p"][4, 0]
    h = x1 @ w1[:E] + x2 @ w1[E:] + b1
    mean = h.mean(axis=0, keepdims=True)
    var = ((h - mean) ** 2).mean(axis=0, keepdims=True)
    hn = (h - mean) / jnp.sqrt(var + BN_EPS) * gamma + beta
    r = jnp.maximum(hn, 0.0)
    return jax.nn.sigmoid(r @ w4.reshape(E, 1) + b4)


if __name__ == "__main__":
    key = jax.random.PRNGKey(0)
    k_x1, k_x2, k_p = jax.random.split(key, 3)

    B, E = 8, 32  # batch, embedding_dim
    x1 = jax.random.normal(k_x1, (B, E), jnp.float32)
    x2 = jax.random.normal(k_x2, (B, E), jnp.float32)

    # Exact-parity path: f32 weight storage, tight tolerance.
    params_f32 = init_params(k_p, E, matmul_dtype=jnp.float32)
    out = jax.block_until_ready(mike_net_linear_fc(x1, x2, params_f32))
    ref = reference(x1, x2, params_f32)
    assert out.shape == (B, 1)
    assert jnp.allclose(out, ref, atol=1e-5, rtol=1e-5), "f32 mismatch vs JAX reference"

    # Default path: bf16 weight storage (half weight bytes, 2x MXU rate on
    # v6e/v7x); f32 accumulation, looser tolerance vs the f32-matmul reference.
    params_bf16 = init_params(k_p, E)
    out_bf = jax.block_until_ready(mike_net_linear_fc(x1, x2, params_bf16))
    ref_bf = reference(x1, x2, params_bf16)
    assert jnp.allclose(out_bf, ref_bf, atol=5e-2, rtol=5e-2), "bf16 mismatch vs JAX reference"

    print("KERNEL_OK")
</pallas_src>

<mosaic_0001>
module attributes {stable_mosaic.version = 11 : i64} {
  func.func @mike_net_kernel(%arg0: memref<8x32xf32, #tpu.memory_space<vmem>>, %arg1: memref<8x32xf32, #tpu.memory_space<vmem>>, %arg2: memref<64x32xf32, #tpu.memory_space<vmem>>, %arg3: memref<5x32xf32, #tpu.memory_space<vmem>>, %arg4: memref<8x1xf32, #tpu.memory_space<vmem>>) attributes {dimension_semantics = [], scalar_prefetch = 0 : i64, scratch_operands = 0 : i64, tpu.core_type = #tpu.core_type<tc>} {
    %c0 = arith.constant 0 : index
    %c0_0 = arith.constant 0 : index
    %0 = vector.load %arg3[%c0, %c0_0] : memref<5x32xf32, #tpu.memory_space<vmem>>, vector<1x32xf32>
    %c1 = arith.constant 1 : index
    %c0_1 = arith.constant 0 : index
    %1 = vector.load %arg3[%c1, %c0_1] : memref<5x32xf32, #tpu.memory_space<vmem>>, vector<1x32xf32>
    %c2 = arith.constant 2 : index
    %c0_2 = arith.constant 0 : index
    %2 = vector.load %arg3[%c2, %c0_2] : memref<5x32xf32, #tpu.memory_space<vmem>>, vector<1x32xf32>
    %c3 = arith.constant 3 : index
    %c0_3 = arith.constant 0 : index
    %3 = vector.load %arg3[%c3, %c0_3] : memref<5x32xf32, #tpu.memory_space<vmem>>, vector<1x32xf32>
    %c4 = arith.constant 4 : index
    %c0_4 = arith.constant 0 : index
    %4 = vector.load %arg3[%c4, %c0_4] : memref<5x32xf32, #tpu.memory_space<vmem>>, vector<1x1xf32>
    %c0_5 = arith.constant 0 : index
    %c0_6 = arith.constant 0 : index
    %5 = vector.load %arg0[%c0_5, %c0_6] : memref<8x32xf32, #tpu.memory_space<vmem>>, vector<8x32xf32>
    %c0_7 = arith.constant 0 : index
    %c0_8 = arith.constant 0 : index
    %6 = vector.load %arg2[%c0_7, %c0_8] : memref<64x32xf32, #tpu.memory_space<vmem>>, vector<32x32xf32>
    %cst = arith.constant dense<0.000000e+00> : vector<8x32xf32>
    %7 = tpu.matmul %5, %6, %cst {dimension_numbers = #tpu.dot_dimension_numbers<[1], [0], [0], [1], [0, 0, 1, 1], [], []>} : vector<8x32xf32>, vector<32x32xf32>, vector<8x32xf32> -> vector<8x32xf32>
    %c0_9 = arith.constant 0 : index
    %c0_10 = arith.constant 0 : index
    %8 = vector.load %arg1[%c0_9, %c0_10] : memref<8x32xf32, #tpu.memory_space<vmem>>, vector<8x32xf32>
    %c32 = arith.constant 32 : index
    %c0_11 = arith.constant 0 : index
    %9 = vector.load %arg2[%c32, %c0_11] : memref<64x32xf32, #tpu.memory_space<vmem>>, vector<32x32xf32>
    %cst_12 = arith.constant dense<0.000000e+00> : vector<8x32xf32>
    %10 = tpu.matmul %8, %9, %cst_12 {dimension_numbers = #tpu.dot_dimension_numbers<[1], [0], [0], [1], [0, 0, 1, 1], [], []>} : vector<8x32xf32>, vector<32x32xf32>, vector<8x32xf32> -> vector<8x32xf32>
    %11 = arith.addf %7, %10 : vector<8x32xf32>
    %12 = vector.broadcast %0 : vector<1x32xf32> to vector<8x32xf32>
    %13 = arith.addf %11, %12 : vector<8x32xf32>
    %cst_13 = arith.constant dense<0.000000e+00> : vector<32xf32>
    %14 = vector.multi_reduction <add>, %13, %cst_13 [0] : vector<8x32xf32> to vector<32xf32>
    %15 = vector.shape_cast %14 : vector<32xf32> to vector<1x32xf32>
    %16 = arith.mulf %13, %13 : vector<8x32xf32>
    %cst_14 = arith.constant dense<0.000000e+00> : vector<32xf32>
    %17 = vector.multi_reduction <add>, %16, %cst_14 [0] : vector<8x32xf32> to vector<32xf32>
    %18 = vector.shape_cast %17 : vector<32xf32> to vector<1x32xf32>
    %cst_15 = arith.constant 1.250000e-01 : f32
    %19 = vector.broadcast %cst_15 : f32 to vector<1x32xf32>
    %20 = arith.mulf %15, %19 : vector<1x32xf32>
    %cst_16 = arith.constant 1.250000e-01 : f32
    %21 = vector.broadcast %cst_16 : f32 to vector<1x32xf32>
    %22 = arith.mulf %18, %21 : vector<1x32xf32>
    %23 = arith.mulf %20, %20 : vector<1x32xf32>
    %24 = arith.subf %22, %23 : vector<1x32xf32>
    %cst_17 = arith.constant 0.000000e+00 : f32
    %25 = vector.broadcast %cst_17 : f32 to vector<1x32xf32>
    %26 = arith.maximumf %24, %25 : vector<1x32xf32>
    %cst_18 = arith.constant 9.99999974E-6 : f32
    %27 = vector.broadcast %cst_18 : f32 to vector<1x32xf32>
    %28 = arith.addf %26, %27 : vector<1x32xf32>
    %29 = math.rsqrt %28 : vector<1x32xf32>
    %30 = arith.mulf %29, %1 : vector<1x32xf32>
    %31 = arith.mulf %20, %30 : vector<1x32xf32>
    %32 = arith.subf %2, %31 : vector<1x32xf32>
    %33 = vector.broadcast %30 : vector<1x32xf32> to vector<8x32xf32>
    %34 = arith.mulf %13, %33 : vector<8x32xf32>
    %35 = vector.broadcast %32 : vector<1x32xf32> to vector<8x32xf32>
    %36 = arith.addf %34, %35 : vector<8x32xf32>
    %cst_19 = arith.constant 0.000000e+00 : f32
    %37 = vector.broadcast %cst_19 : f32 to vector<8x32xf32>
    %38 = arith.maximumf %36, %37 : vector<8x32xf32>
    %39 = vector.broadcast %3 : vector<1x32xf32> to vector<8x32xf32>
    %40 = arith.mulf %38, %39 : vector<8x32xf32>
    %cst_20 = arith.constant dense<0.000000e+00> : vector<8xf32>
    %41 = vector.multi_reduction <add>, %40, %cst_20 [1] : vector<8x32xf32> to vector<8xf32>
    %42 = vector.shape_cast %41 : vector<8xf32> to vector<8x1xf32>
    %43 = vector.broadcast %4 : vector<1x1xf32> to vector<8x1xf32>
    %44 = arith.addf %42, %43 : vector<8x1xf32>
    %45 = arith.negf %44 : vector<8x1xf32>
    %46 = math.exp %45 : vector<8x1xf32>
    %cst_21 = arith.constant 1.000000e+00 : f32
    %47 = vector.broadcast %cst_21 : f32 to vector<8x1xf32>
    %48 = arith.addf %47, %46 : vector<8x1xf32>
    %49 = arith.divf %47, %48 : vector<8x1xf32>
    %c0_22 = arith.constant 0 : index
    %c0_23 = arith.constant 0 : index
    %50 = vector.load %arg4[%c0_22, %c0_23] : memref<8x1xf32, #tpu.memory_space<vmem>>, vector<8x1xf32>
    tpu.vector_store %arg4[%c0_22, %c0_23], %49 {strides = array<i32>} : memref<8x1xf32, #tpu.memory_space<vmem>>, vector<8x1xf32>,
    return
  }
}

</mosaic_0001>

<bundles_post_ra>
// kernel: tpu_custom_call.1
= control target key start
LH: loop header
LB: loop body
LE: loop exit
PB: predicated region body
PF: predicated region fallthrough
CT: control target
= control target key end

     0   :  { %v291_v0 = vmov 0.0   ;;  %vm32_vm0 = vcmask 261120   ;;  %vm292_vm1 = vmmov 0   ;;  %v209_v39 = vlaneseq  ;;  %s371_s2 = inlined_call_operand.vmem [shape: f32[64,32], index: 2, kind: input, shape index: {}]   ;;  %s372_s1 = inlined_call_operand.vmem [shape: f32[8,32], index: 1, kind: input, shape index: {}]   ;;  %s373_s0 = inlined_call_operand.vmem [shape: f32[8,32], index: 0, kind: input, shape index: {}]   ;;  %s374_s3 = inlined_call_operand.vmem [shape: f32[5,32], index: 3, kind: input, shape index: {}]   ;;  %s375_s4 = inlined_call_operand.vmem [shape: f32[8,1], index: 4, kind: output, shape index: {}]  }
   0x1   :  { %261 = vmatprep.subr.mxu0 %v291_v0  ;;  %272 = vmatprep.subr.mxu1 %v291_v0  ;;  %v31_v1 = vld [vmem:[%s371_s2 + $0x38] sm:$0xff]  ;;  %v30_v3 = vld [vmem:[%s371_s2 + $0x30] sm:$0xff]  ;;  %v29_v5 = vld [vmem:[%s371_s2 + $0x28] sm:$0xff]  ;;  %vm239_vm2 = vcmask 7168  }
   0x2   :  { %v26_v2 = vld [vmem:[%s371_s2 + $0x18] sm:$0xff]  ;;  %262 = vmatpush3.msra.mxu0 %v31_v1  ;;  %v25_v4 = vld [vmem:[%s371_s2 + $0x10] sm:$0xff]  ;;  %v24_v6 = vld [vmem:[%s371_s2 + $0x8] sm:$0xff]  ;;  %269 = vmatprep.mubr.msk.f32.mxu0 %vm292_vm1, %v291_v0  ;;  %v210_v40 = vshrl.u32 %v209_v39, 7 }
   0x3   :  { %273 = vmatpush3.msra.mxu1 %v26_v2  ;;  %263 = vmatprep.subr.mxu0 %v291_v0  ;;  %v28_v7 = vld [vmem:[%s371_s2 + $0x20] sm:$0xff] }
   0x4   :  { %274 = vmatprep.subr.mxu1 %v291_v0  ;;  %264 = vmatpush3.msra.mxu0 %v30_v3  ;;  %v23_v8 = vld [vmem:[%s371_s2] sm:$0xff]  ;;  %v211_v42 = vsub.s32 0, %v210_v40 }
   0x5   :  { %275 = vmatpush3.msra.mxu1 %v25_v4  ;;  %265 = vmatprep.subr.mxu0 %v291_v0  ;;  %v27_v9 = vld [vmem:[%s372_s1] sm:$0xff] }
   0x6   :  { %276 = vmatprep.subr.mxu1 %v291_v0  ;;  %266 = vmatpush3.msra.mxu0 %v29_v5  ;;  %v22_v10 = vld [vmem:[%s373_s0] sm:$0xff] }
   0x7   :  { %277 = vmatpush3.msra.mxu1 %v24_v6  ;;  %267 = vmatprep.subr.mxu0 %v291_v0  ;;  %v247_v12 = vld [vmem:[%s374_s3] ss:$0 sm:$0xff]  ;;  %v18_v41 = vld [vmem:[%s374_s3 + $0x1] sm:$0x1]  ;;  %v19_v45 = vld [vmem:[%s374_s3 + $0x2] sm:$0x1] }
   0x8   :  { %278 = vmatprep.subr.mxu1 %v291_v0  ;;  %268 = vmatpush3.msra.mxu0 %v28_v7  ;;  %v248_v52 = vld [vmem:[%s374_s3 + $0x3] ss:$0 sm:$0xff]  ;;  %v249_v56 = vld [vmem:[%s374_s3 + $0x4] ss:$0 sm:$0xff] }
   0x9   :  { %279 = vmatpush3.msra.mxu1 %v23_v8  ;;  %280 = vmatprep.mubr.msk.f32.mxu1 %vm292_vm1, %v291_v0 }
   0xa   :  { %270 = vmatmul.mubr.msk.f32.vlgmr.msra.gmra.mxu0 %vm32_vm0, %v27_v9  ;;  %281 = vmatmul.mubr.msk.f32.vlgmr.msra.gmra.mxu1 %vm32_vm0, %v22_v10 }
  0xca   :  { %v102_v11 = vpop.f32.mrf.mxu0  ;;  %v175_v13 = vpop.f32.mrf.mxu1 }
  0xcb   :  { %v176_v14 = vadd.f32 %v175_v13, %v102_v11 }
  0xcc   :  { %v271_v15 = vpop.f32.mrf.mxu0  ;;  %v282_v16 = vpop.f32.mrf.mxu1 }
  0xcd   :  { %v183_v17 = vadd.f32 %v247_v12, %v176_v14 }
  0xcf   :  { %v184_v18 = vsel %vm32_vm0, %v183_v17, 0.0  ;;  %v191_v19 = vmul.f32 %v183_v17, %v183_v17 }
  0xd0   :  { %v185_v20 = vrot.slane %v184_v18, 4 }
  0xd1   :  { %v192_v21 = vsel %vm32_vm0, %v191_v19, 0.0 }
  0xd2   :  { %v186_v22 = vadd.f32 %v185_v20, %v184_v18  ;;  %v193_v23 = vrot.slane %v192_v21, 4 }
  0xd4   :  { %v187_v24 = vrot.slane %v186_v22, 2  ;;  %v194_v25 = vadd.f32 %v193_v23, %v192_v21 }
  0xd6   :  { %v188_v26 = vadd.f32 %v187_v24, %v186_v22  ;;  %v195_v27 = vrot.slane %v194_v25, 2 }
  0xd8   :  { %v189_v28 = vrot.slane %v188_v26, 1  ;;  %v196_v29 = vadd.f32 %v195_v27, %v194_v25 }
  0xda   :  { %v190_v30 = vadd.f32 %v189_v28, %v188_v26  ;;  %v197_v31 = vrot.slane %v196_v29, 1 }
  0xdc   :  { %v198_v32 = vadd.f32 %v197_v31, %v196_v29  ;;  %v199_v33 = vmul.f32 0.125, %v190_v30 }
  0xde   :  { %v200_v34 = vmul.f32 0.125, %v198_v32  ;;  %v201_v35 = vmul.f32 %v199_v33, %v199_v33 }
  0xe0   :  { %v202_v36 = vsub.f32 %v200_v34, %v201_v35 }
  0xe2   :  { %v203_v37 = vmax.f32 %v202_v36, 0.0 }
  0xe4   :  { %v204_v38 = vadd.f32 1e-05, %v203_v37 }
  0xe6   :  { %285 = vrsqrt.f32 %v204_v38 }
  0xf3   :  { %v286_v43 = vpop.eup %285 }
  0xf4   :  { %v206_v44 = vmul.f32 %v286_v43, %v18_v41 }
  0xf6   :  { %v207_v46 = vmul.f32 %v206_v44, %v199_v33  ;;  %v212_v47 = vrot.slane %v206_v44, %v211_v42 }
  0xf8   :  { %v208_v48 = vsub.f32 %v19_v45, %v207_v46  ;;  %v213_v49 = vmul.f32 %v212_v47, %v183_v17 }
  0xfa   :  { %v217_v50 = vrot.slane %v208_v48, %v211_v42 }
  0xfc   :  { %v218_v51 = vadd.f32 %v217_v50, %v213_v49 }
  0xfe   :  { %v219_v53 = vmax.f32 %v218_v51, 0.0 }
 0x100   :  { %v224_v54 = vmul.f32 %v248_v52, %v219_v53 }
 0x102   :  { %v225_v55 = vsel %vm32_vm0, %v224_v54, 0.0 }
 0x103   :  { %226 = vadd.xlane.f32.xlu0 %v225_v55 }
 0x18c   :  { %v227_v57 = vpop.xlane.xlu0 %226 }
 0x18d   :  { %v232_v58 = vadd.f32 %v249_v56, %v227_v57 }
 0x18f   :  { %v250_v59 = vmul.f32 -1.442695, %v232_v58 }
 0x191   :  { %287 = vpow2.f32 %v250_v59 }
 0x19e   :  { %v288_v60 = vpop.eup %287 }
 0x19f   :  { %v236_v61 = vadd.f32 1.0, %v288_v60 }
 0x1a1   :  { %289 = vrcp.f32 %v236_v61 }
 0x1ae   :  { %v290_v62 = vpop.eup %289 }
 0x1af   :  { %240 = vst.msk [vmem:[%s375_s4] sm:$0xff] %vm239_vm2, %v290_v62 }

</bundles_post_ra>
